<compile_context>
chip_gen: v7x
topology: tpu7x:2x2x1
jax: 0.10.0
libtpu: 0.0.40
codegen_flags: <defaults>
</compile_context>

<pallas_src>
import functools
import math

import jax
import jax.numpy as jnp
from jax.experimental import pallas as pl
from jax.experimental.pallas import tpu as pltpu


def _upsample_kernel(x_rep_ref, a_ref, o_ref, *, K: int):
    """One (batch, L-tile, Cout-tile) grid step.

    x_rep_ref: (1, Cin, M)          x element-repeated K times along length, M = tile_l*K
    a_ref:     (tile_co, K*(Cin+1)) fused weight+bias operand
    o_ref:     (1, tile_co, M)      output tile, already phase-interleaved (lane-dense)
    """
    xr = x_rep_ref[0]                                   # (Cin, M)
    M = xr.shape[-1]
    # Phase of each output lane: m % K.
    phase = jax.lax.broadcasted_iota(jnp.int32, (1, M), 1) % K
    masks = [(phase == k).astype(xr.dtype) for k in range(K)]          # K x (1, M)
    # Rows k*Cin+ci: x[b, ci, m//K] masked to phase k.
    # Rows K*Cin+k : the mask itself (contracts against the bias columns of `a`,
    #                so the per-phase bias is added by the MXU for free).
    xb = jnp.concatenate([xr * m for m in masks] + masks, axis=0)      # (K*(Cin+1), M)
    acc = jnp.dot(a_ref[...], xb,
                  preferred_element_type=jnp.float32,
                  precision=jax.lax.Precision.HIGHEST)
    o_ref[0] = acc.astype(o_ref.dtype)


def _pick_tile(dim, target, align):
    """Tile for `dim`: the full dim if it fits the target, else the largest `align`-multiple
    divisor <= target; if none exists, clamp to an aligned tile (caller uses a cdiv grid and
    Pallas masks the ragged last block) instead of silently blowing VMEM."""
    target = max(align, (target // align) * align)
    if dim <= target:
        return dim
    t = target
    while t >= align:
        if dim % t == 0:
            return t
        t -= align
    return target


def _vmem_limit_bytes():
    # Generation-aware cap: ~48 MiB on v7x (64 MiB physical), ~100 MiB on v5e/v6e (128 MiB).
    try:
        cap = pltpu.get_tpu_info().vmem_capacity_bytes
        return int(min(100 * 1024 * 1024, max(32 * 1024 * 1024, cap - 16 * 1024 * 1024)))
    except Exception:
        return 48 * 1024 * 1024


def learned_upsampling_1d(x, weight, bias=None, *, out_tile_bytes=8 * 1024 * 1024,
                          cout_tile_target=512):
    """Forward pass of LearnedUpsampling1d.

    x:      (B, Cin, L)     float32 (PyTorch NCL layout)
    weight: (Cin, Cout, K)  ConvTranspose1d weight (stride == K, no conv bias)
    bias:   (Cout, K)       learned per-phase bias (or None)
    returns (B, Cout, L*K)  float32
    """
    B, Cin, L = x.shape
    wc, Cout, K = weight.shape
    assert wc == Cin, (wc, Cin)
    if bias is None:
        bias = jnp.zeros((Cout, K), dtype=x.dtype)

    # Fused matmul operand (tiny):
    #   A[co, k*Cin + ci] = W[ci, co, k];   A[co, K*Cin + k] = bias[co, k]
    a_x = jnp.transpose(weight, (1, 2, 0)).reshape(Cout, K * Cin)
    a = jnp.concatenate([a_x, bias.astype(x.dtype)], axis=1)           # (Cout, K*(Cin+1))
    c_rows = K * (Cin + 1)

    # x element-repeated K times along length: x_rep[b, ci, l*K + k] = x[b, ci, l].
    # One cheap XLA pass over the smallest tensor; buys a relayout-free interleaved store.
    x_rep = jnp.repeat(x, K, axis=-1)                                   # (B, Cin, L*K)

    itemsize = jnp.dtype(x.dtype).itemsize
    tile_co = _pick_tile(Cout, cout_tile_target, 128)
    lane_align = max(1, 128 // math.gcd(K, 128))        # tile_l*K must be a 128-multiple
    tile_l_target = max(lane_align, out_tile_bytes // (tile_co * K * itemsize))
    tile_l = _pick_tile(L, tile_l_target, lane_align)

    num_l = pl.cdiv(L, tile_l)
    num_co = pl.cdiv(Cout, tile_co)
    # Cout-tile axis innermost: the x_rep block index is unchanged across it, so that block
    # stays resident; the tiny `a` block is cheap to re-fetch. All axes are independent.
    grid = (B, num_l, num_co)

    out = pl.pallas_call(
        functools.partial(_upsample_kernel, K=K),
        out_shape=jax.ShapeDtypeStruct((B, Cout, L * K), x.dtype),
        grid=grid,
        in_specs=[
            pl.BlockSpec((1, Cin, tile_l * K), lambda b, li, jco: (b, 0, li)),
            pl.BlockSpec((tile_co, c_rows), lambda b, li, jco: (jco, 0)),
        ],
        out_specs=pl.BlockSpec((1, tile_co, tile_l * K),
                               lambda b, li, jco: (b, jco, li)),
        compiler_params=pltpu.CompilerParams(
            dimension_semantics=("parallel", "parallel", "parallel"),
            vmem_limit_bytes=_vmem_limit_bytes(),
        ),
        cost_estimate=pl.CostEstimate(
            flops=2 * B * Cout * L * K * c_rows,
            transcendentals=0,
            bytes_accessed=itemsize * (B * Cin * L * K                          # x_rep read
                                       + B * num_l * num_co * tile_co * c_rows  # a re-reads
                                       + B * Cout * L * K),                     # output write
        ),
    )(x_rep, a)
    return out


def _reference(x, weight, bias):
    # Pure-JAX reference of the same math (full f32 precision).
    B, Cin, L = x.shape
    _, Cout, K = weight.shape
    o = jnp.einsum("bil,iok->bolk", x, weight,
                   precision=jax.lax.Precision.HIGHEST) + bias[None, :, None, :]
    return o.reshape(B, Cout, L * K)


def _run_case(B, Cin, Cout, L, K, seed=0):
    key = jax.random.PRNGKey(seed)
    kx, kw, kb = jax.random.split(key, 3)
    x = jax.random.normal(kx, (B, Cin, L), dtype=jnp.float32)
    weight = jax.random.normal(kw, (Cin, Cout, K), dtype=jnp.float32) * 0.1
    # Module inits bias to 0; use small random values so the bias path is exercised.
    bias = jax.random.normal(kb, (Cout, K), dtype=jnp.float32) * 0.01

    out = jax.block_until_ready(learned_upsampling_1d(x, weight, bias))
    ref = _reference(x, weight, bias)
    assert out.shape == (B, Cout, L * K), out.shape
    assert jnp.allclose(out, ref, atol=1e-4, rtol=1e-4), \
        f"mismatch vs reference for case {(B, Cin, Cout, L, K)}"


if __name__ == "__main__":
    # Module-consistent small shapes: batch=2, in_channels=4, out_channels=4,
    # length=16, kernel_size(=stride)=4 -> output length 64.
    _run_case(B=2, Cin=4, Cout=4, L=16, K=4, seed=0)

    # Larger shape exercising real tiling (lane-dense 4096-wide output blocks, 2-step grid).
    _run_case(B=2, Cin=8, Cout=512, L=1024, K=4, seed=0)

    print("KERNEL_OK")
</pallas_src>

<mosaic_0001>
module attributes {stable_mosaic.version = 11 : i64} {
  func.func @_upsample_kernel(%arg0: i32, %arg1: i32, %arg2: i32, %arg3: memref<1x4x64xf32, #tpu.memory_space<vmem>>, %arg4: memref<4x20xf32, #tpu.memory_space<vmem>>, %arg5: memref<1x4x64xf32, #tpu.memory_space<vmem>>) attributes {dimension_semantics = [#tpu.dimension_semantics<parallel>, #tpu.dimension_semantics<parallel>, #tpu.dimension_semantics<parallel>], iteration_bounds = array<i64: 2, 1, 1>, scalar_prefetch = 0 : i64, scratch_operands = 0 : i64, tpu.core_type = #tpu.core_type<tc>, window_params = [{transform_indices = @transform_0, window_bounds = array<i64: 1, 4, 64>}, {transform_indices = @transform_1, window_bounds = array<i64: 4, 20>}, {transform_indices = @transform_2, window_bounds = array<i64: 1, 4, 64>}]} {
    %c0 = arith.constant 0 : index
    %c0_0 = arith.constant 0 : index
    %c0_1 = arith.constant 0 : index
    %0 = vector.load %arg3[%c0, %c0_0, %c0_1] : memref<1x4x64xf32, #tpu.memory_space<vmem>>, vector<1x4x64xf32>
    %1 = vector.shape_cast %0 : vector<1x4x64xf32> to vector<4x64xf32>
    %2 = tpu.iota {dimensions = array<i32: 1>} : vector<1x64xi32>
    %c4_i32 = arith.constant 4 : i32
    %c0_i32 = arith.constant 0 : i32
    %3 = arith.cmpi eq, %c4_i32, %c0_i32 : i32
    %c1_i32 = arith.constant 1 : i32
    %4 = arith.select %3, %c1_i32, %c4_i32 : i32
    %5 = vector.broadcast %4 : i32 to vector<1x64xi32>
    %6 = arith.remsi %2, %5 : vector<1x64xi32>
    %c0_i32_2 = arith.constant 0 : i32
    %7 = vector.broadcast %c0_i32_2 : i32 to vector<1x64xi32>
    %8 = arith.cmpi ne, %6, %7 : vector<1x64xi32>
    %c0_i32_3 = arith.constant 0 : i32
    %9 = vector.broadcast %c0_i32_3 : i32 to vector<1x64xi32>
    %10 = arith.cmpi slt, %6, %9 : vector<1x64xi32>
    %c0_i32_4 = arith.constant 0 : i32
    %11 = arith.cmpi slt, %4, %c0_i32_4 : i32
    %12 = vector.broadcast %11 : i1 to vector<1x64xi1>
    %13 = vector.broadcast %12 : vector<1x64xi1> to vector<1x64xi1>
    %14 = arith.xori %10, %13 : vector<1x64xi1>
    %15 = arith.andi %14, %8 : vector<1x64xi1>
    %16 = vector.broadcast %4 : i32 to vector<1x64xi32>
    %17 = arith.addi %6, %16 : vector<1x64xi32>
    %18 = arith.select %15, %17, %6 : vector<1x64xi1>, vector<1x64xi32>
    %c0_i32_5 = arith.constant 0 : i32
    %19 = vector.broadcast %c0_i32_5 : i32 to vector<1x64xi32>
    %20 = arith.cmpi eq, %18, %19 : vector<1x64xi32>
    %21 = arith.extui %20 : vector<1x64xi1> to vector<1x64xi32>
    %22 = arith.sitofp %21 : vector<1x64xi32> to vector<1x64xf32>
    %c1_i32_6 = arith.constant 1 : i32
    %23 = vector.broadcast %c1_i32_6 : i32 to vector<1x64xi32>
    %24 = arith.cmpi eq, %18, %23 : vector<1x64xi32>
    %25 = arith.extui %24 : vector<1x64xi1> to vector<1x64xi32>
    %26 = arith.sitofp %25 : vector<1x64xi32> to vector<1x64xf32>
    %c2_i32 = arith.constant 2 : i32
    %27 = vector.broadcast %c2_i32 : i32 to vector<1x64xi32>
    %28 = arith.cmpi eq, %18, %27 : vector<1x64xi32>
    %29 = arith.extui %28 : vector<1x64xi1> to vector<1x64xi32>
    %30 = arith.sitofp %29 : vector<1x64xi32> to vector<1x64xf32>
    %c3_i32 = arith.constant 3 : i32
    %31 = vector.broadcast %c3_i32 : i32 to vector<1x64xi32>
    %32 = arith.cmpi eq, %18, %31 : vector<1x64xi32>
    %33 = arith.extui %32 : vector<1x64xi1> to vector<1x64xi32>
    %34 = arith.sitofp %33 : vector<1x64xi32> to vector<1x64xf32>
    %35 = vector.broadcast %22 : vector<1x64xf32> to vector<4x64xf32>
    %36 = arith.mulf %1, %35 : vector<4x64xf32>
    %37 = vector.broadcast %26 : vector<1x64xf32> to vector<4x64xf32>
    %38 = arith.mulf %1, %37 : vector<4x64xf32>
    %39 = vector.broadcast %30 : vector<1x64xf32> to vector<4x64xf32>
    %40 = arith.mulf %1, %39 : vector<4x64xf32>
    %41 = vector.broadcast %34 : vector<1x64xf32> to vector<4x64xf32>
    %42 = arith.mulf %1, %41 : vector<4x64xf32>
    %43 = tpu.concatenate %36, %38, %40, %42, %22, %26, %30, %34 in 0 : vector<4x64xf32>, vector<4x64xf32>, vector<4x64xf32>, vector<4x64xf32>, vector<1x64xf32>, vector<1x64xf32>, vector<1x64xf32>, vector<1x64xf32> -> vector<20x64xf32>
    %c0_7 = arith.constant 0 : index
    %c0_8 = arith.constant 0 : index
    %44 = vector.load %arg4[%c0_7, %c0_8] : memref<4x20xf32, #tpu.memory_space<vmem>>, vector<4x20xf32>
    %cst = arith.constant dense<0.000000e+00> : vector<4x64xf32>
    %45 = tpu.matmul %44, %43, %cst {dimension_numbers = #tpu.dot_dimension_numbers<[1], [0], [0], [1], [0, 0, 1, 1], [], []>, precision = #tpu.contract_precision<fp32>} : vector<4x20xf32>, vector<20x64xf32>, vector<4x64xf32> -> vector<4x64xf32>
    %c0_9 = arith.constant 0 : index
    %c0_10 = arith.constant 0 : index
    %c0_11 = arith.constant 0 : index
    %46 = vector.load %arg5[%c0_9, %c0_10, %c0_11] : memref<1x4x64xf32, #tpu.memory_space<vmem>>, vector<1x4x64xf32>
    %47 = vector.shape_cast %46 : vector<1x4x64xf32> to vector<4x64xf32>
    %48 = vector.shape_cast %45 : vector<4x64xf32> to vector<1x4x64xf32>
    tpu.vector_store %arg5[%c0_9, %c0_10, %c0_11], %48 {strides = array<i32>} : memref<1x4x64xf32, #tpu.memory_space<vmem>>, vector<1x4x64xf32>,
    return
  }
  func.func @transform_0(%arg0: i32, %arg1: i32, %arg2: i32) -> (i32, i32, i32) {
    %c0_i32 = arith.constant 0 : i32
    %c0_i32_0 = arith.constant 0 : i32
    return %arg0, %c0_i32, %arg1 : i32, i32, i32
  }
  func.func @transform_1(%arg0: i32, %arg1: i32, %arg2: i32) -> (i32, i32) {
    %c0_i32 = arith.constant 0 : i32
    %c0_i32_0 = arith.constant 0 : i32
    return %arg2, %c0_i32 : i32, i32
  }
  func.func @transform_2(%arg0: i32, %arg1: i32, %arg2: i32) -> (i32, i32, i32) {
    %c0_i32 = arith.constant 0 : i32
    return %arg0, %arg2, %arg1 : i32, i32, i32
  }
}

</mosaic_0001>

<bundles_post_ra>
// kernel: tpu_custom_call.1
= control target key start
LH: loop header
LB: loop body
LE: loop exit
PB: predicated region body
PF: predicated region fallthrough
CT: control target
= control target key end

     0   :  { %7 = vsyncpa [#allocation3], 0  ;;  %s1464_s0 = inlined_call_operand.hbm [shape: f32[2,4,64], index: 0, kind: input, shape index: {}]   ;;  %s1465_s1 = inlined_call_operand.hbm [shape: f32[4,20], index: 1, kind: input, shape index: {}]   ;;  %s1466_s2 = inlined_call_operand.hbm [shape: f32[2,4,64], index: 2, kind: output, shape index: {}]  }
   0x1   :  { %9 = vsyncpa [#allocation3 + $0x1], 0 }
   0x2   :  { %10 = vsyncpa [#allocation6], 0 }
   0x3   :  { %11 = vsyncpa [#allocation4], 0 }
   0x4   :  { %13 = vsyncpa [#allocation4 + $0x1], 0  ;;  %s1212_s9 = smov 0   ;;  %s1214_s10 = smov 0  }
   0x5   :  { %s1216_s11 = smov 0   ;;  %s1218_s12 = smov 0  }
   0x6   :  { %s1220_s13 = smov 0   ;;  %s1222_s14 = smov 0  }
   0x7 LB: > { %s845_s15 = sadd.s32 4294967295, %s1189_s14   ;;  %s846_s16 = sadd.s32 4294967294, %s1189_s14   ;;  %s1189_s14 = sphi %s1222_s14, %s19_s14   ;;  %s1185_s13 = sphi %s1220_s13, %s1491_s13   ;;  %s1181_s12 = sphi %s1218_s12, %s1490_s12   ;;  %s1177_s11 = sphi %s1216_s11, %s1489_s11   ;;  %s1173_s10 = sphi %s1214_s10, %s1488_s10   ;;  %s1169_s9 = sphi %s1212_s9, %s1487_s9  }
   0x8   : > { %p60_p0 = scmp.ne.s32.totalorder %s1173_s10, %s1169_s9  ;;  %p1246_p1 = scmp.eq.s32.totalorder %s845_s15, 0 }
   0x9   : > { %p1250_p2 = scmp.eq.s32.totalorder %s845_s15, 1  ;;  %p120_p3 = scmp.eq.s32.totalorder %s846_s16, 1 }
   0xa   : > { %s1471_s17 = scalar_select %p1246_p1, 1, 0 }
   0xb   : > { %s1472_s18 = scalar_select %p1250_p2, 1, 0 }
   0xc   : > { %p1256_p4 = por %p1246_p1, %p60_p0  ;;  %p847_p5 = scmp.ge.s32.totalorder %s1189_s14, 1 }
   0xd   : > { %p1261_p6 = por %p120_p3, %p60_p0  ;;  %p127_p7 = scmp.lt.s32.totalorder %s1189_s14, 3 }
   0xe   : > { %s1473_s19 = scalar_select %p1256_p4, 1, 0 }
   0xf   : > { %s1474_s20 = scalar_select %p1261_p6, 1, 0 }
  0x10   : > { %p1266_p8 = pnand %p847_p5, %p127_p7  ;;  %s1191_s22 = smov [#allocation5]  }
  0x11   : > { %s142_s23 = sshll.u32 %s1191_s22, 4  ;;  %s38_s25 = sadd.s32 1, %s1185_s13  ;;  %s143_s23 = int_to_ptr.vmem [resolvable:$true] %s142_s23 }
  0x12   : > { %s1475_s21 = scalar_select %p1266_p8, 1, 0 }
  0x13   : > { %p977_p10 = pneg %p1266_p8  ;;  %s47_s26 = sadd.s32 1, %s1177_s11 }
  0x14   : > { %p1281_p12 = scmp.ge.s32.totalorder %s38_s25, 2  ;;  %s1045_s30 = scalar_lea.hbm %s1465_s1, 64 }
  0x15   : > { %p1275_p11 = pnand %p977_p10, %p1246_p1  ;;  %p1046_p13 = scmp.ne.s32.totalorder %s1465_s1, %s1045_s30 }
  0x16   : > { %s1477_s27 = scalar_select %p1281_p12, 1, 0 }
  0x17   : > { %p1047_p0 = pneg %p1275_p11  ;;  %p1052_p7 = scmp.lt.u32.totalorder %s1045_s30, %s1465_s1 }
  0x19   : > { %p1048_p3 = pnand %p1047_p0, %p1046_p13 }
  0x1b   : > { %p1049_p5 = pneg %p1048_p3 }
  0x1d   : > { %p1054_p10 = pnand %p1052_p7, %p1049_p5 }
  0x1f   : > { %1057 = shalt.err (!%p1054_p10)
}
  0x20   : > { %s1058_s7 = scalar_lea.vmem %s143_s23, 64  ;;  %p1066_p4 = scmp.lt.s32.totalorder %s143_s23, %s143_s23 }
  0x21   : > { %p1059_p9 = scmp.ne.s32.totalorder %s143_s23, %s1058_s7  ;;  %p1067_p8 = scmp.lt.s32.totalorder %s1058_s7, %s1058_s7 }
  0x23   : > { %p1061_p6 = pnand %p1059_p9, %p1047_p0  ;;  %p1068_p2 = por %p1067_p8, %p1066_p4 }
  0x25   : > { %p1062_p1 = pneg %p1061_p6 }
  0x27   : > { %p1069_p12 = pnand %p1068_p2, %p1062_p1 }
  0x29   : > { %1072 = shalt.err (!%p1069_p12)
}
  0x2a   : > { %980 = dma.hbm_to_vmem [thread:$0]  (!%p1275_p11), %s1465_s1, 64, %s143_s23, [#allocation6]  }
  0x2b   : > { %p1478_p4 = scmp.ne.s32.totalorder %s1477_s27, 0  ;;  %p54_p1 = scmp.ne.s32.totalorder %s1177_s11, %s1173_s10 }
  0x2c   : > { %p55_p2 = scmp.eq.s32.totalorder %s1189_s14, 0  ;;  %p990_p6 = scmp.lt.s32.totalorder %s1189_s14, 2 }
  0x2d   : > { %s1493_s25 = smov (%p1478_p4, %s38_s25), 0  ;;  %p1479_p12 = scmp.ne.s32.totalorder %s1472_s18, 0 }
  0x2e   : > { %s42_s16 = ssub.s32 %s1185_s13, %s1493_s25  ;;  %p56_p9 = por %p55_p2, %p54_p1 }
  0x2f   : > { %p45_p8 = scmp.eq.s32.totalorder %s42_s16, 0  ;;  %p1313_p13 = por %p1479_p12, %p54_p1 }
  0x30   : > { %s153_s24 = sand.u32 1, %s1177_s11   ;;  %s851_s27 = sshll.u32 %s1185_s13, 6 }
  0x31   : > { %s1321_s28 = scalar_select %p45_p8, %s1177_s11, %s47_s26  }
  0x32   : > { %s850_s23 = sshll.u32 %s153_s24, 2  ;;  %s1327_s3 = scalar_lea.hbm %s1464_s0, %s851_s27 }
  0x33   : > { %s157_s18 = scalar_lea.vmem [#allocation2], %s850_s23  ;;  %p1331_p11 = pnand %p990_p6, %p56_p9 }
  0x34   : > { %s165_s4 = sshll.u32 %s157_s18, 4  ;;  %s154_s26 = scalar_lea.sflag [#allocation3], %s153_s24  ;;  %s1329_s4 = int_to_ptr.vmem [resolvable:$true] %s165_s4 }
  0x35   : > { %s1073_s6 = scalar_lea.hbm %s1327_s3, 64  ;;  %p1075_p3 = pneg %p1331_p11 }
  0x36   : > { %p1074_p0 = scmp.ne.s32.totalorder %s1327_s3, %s1073_s6  ;;  %s1078_s15 = scalar_lea.hbm %s1464_s0, 128 }
  0x37   : > { %p1079_p10 = scmp.lt.u32.totalorder %s1327_s3, %s1464_s0  ;;  %p1080_p4 = scmp.lt.u32.totalorder %s1078_s15, %s1073_s6 }
  0x38   : > { %p1076_p5 = pnand %p1075_p3, %p1074_p0  ;;  %p1082_p2 = scmp.lt.u32.totalorder %s1073_s6, %s1327_s3 }
  0x39   : > { %p1081_p1 = por %p1080_p4, %p1079_p10 }
  0x3a   : > { %p1077_p7 = pneg %p1076_p5 }
  0x3b   : > { %p1083_p6 = por %p1082_p2, %p1081_p1 }
  0x3d   : > { %p1084_p8 = pnand %p1083_p6, %p1077_p7 }
  0x3f   : > { %1087 = shalt.err (!%p1084_p8)
}
  0x40   : > { %s1088_s24 = scalar_lea.vmem %s1329_s4, 64  ;;  %s1192_s27 = smov [#allocation2]  }
  0x41   : > { %p1089_p9 = scmp.ne.s32.totalorder %s1329_s4, %s1088_s24  ;;  %s1093_s29 = sshll.u32 %s1192_s27, 4  ;;  %s1094_s29 = int_to_ptr.vmem [resolvable:$false] %s1093_s29 }
  0x42   : > { %s1095_s30 = scalar_lea.vmem %s1094_s29, 128  ;;  %p1096_p5 = scmp.lt.s32.totalorder %s1329_s4, %s1094_s29 }
  0x43   : > { %p1091_p12 = pnand %p1089_p9, %p1075_p3  ;;  %p1097_p10 = scmp.lt.s32.totalorder %s1095_s30, %s1088_s24 }
  0x45   : > { %p1092_p0 = pneg %p1091_p12  ;;  %p1098_p4 = por %p1097_p10, %p1096_p5 }
  0x47   : > { %p1099_p1 = pnand %p1098_p4, %p1092_p0 }
  0x49   : > { %1102 = shalt.err (!%p1099_p1)
}
  0x4a   : > { %984 = dma.hbm_to_vmem [thread:$0]  (!%p1331_p11), %s1327_s3, 64, %s1329_s4, %s154_s26  }
  0x4b   : > { %p1482_p7 = scmp.ne.s32.totalorder %s1475_s21, 0 }
  0x4c   : > { %s1363_s18 = sand.u32 (!%p1482_p7), 1, %s1173_s10   ;;  %p1483_p3 = scmp.ne.s32.totalorder (!%p1482_p7), %s1473_s19, 0 }
  0x4d   : > { %174 = sbr.rel (%p1482_p7) target bundleno = 354 (0x162), region = 28  ;;  %s853_s6 = sshll.u32 (!%p1482_p7), %s1363_s18, 2 }
  0x4e   : > { %s177_s7 = scalar_lea.sflag (!%p1482_p7), [#allocation3], %s1363_s18  ;;  %s180_s8 = scalar_lea.vmem (!%p1482_p7), [#allocation2], %s853_s6 }
  0x54   : > { %1156 = dma.done.wait (%p1483_p3), %s177_s7, 64  }
  0x55   : > { %1158 = vsyncadd (%p1483_p3), %s177_s7, 4294967232  ;;  %p1484_p11 = scmp.ne.s32.totalorder %s1471_s17, 0 }
  0x57   : > { %1160 = dma.done.wait (%p1484_p11), [#allocation6], 64  }
  0x58   : > { %1162 = vsyncadd (%p1484_p11), [#allocation6], 4294967232  ;;  %v206_v0 = vlaneseq  ;;  %v1193_v1 = vmov 0.0|0.0   ;;  %vm1194_vm0 = vmmov 0   ;;  %v1195_v3 = vmov 0.0   ;;  %s861_s17 = sshll.u32 %s1181_s12, 6 }
  0x59   : > { %942 = vmatprep.subr.bf16.mxu1 %v1193_v1  ;;  %951 = vmatprep.subr.bf16.mxu0 %v1193_v1  ;;  %vm245_vm1 = vcmask 1040384   ;;  %vm247_vm2 = vcmask 1041408   ;;  %vm249_vm3 = vcmask 1042432   ;;  %vm252_vm4 = vcmask 162816   ;;  %v205_v5 = vld [vmem:[%s180_s8] sm:$0xf]  ;;  %s1415_s5 = scalar_lea.hbm %s1466_s2, %s861_s17 }
  0x5a   : > { %v207_v2 = vand.u32 127, %v206_v0  ;;  %894 = vmatprep.mubr.msk.f32.mxu1 %vm1194_vm0, %v1195_v3  ;;  %921 = vmatprep.mubr.msk.f32.mxu0 %vm1194_vm0, %v1195_v3  ;;  %v251_v14 = vld [vmem:[#allocation5] sm:$0xf]  ;;  %vm242_vm9 = vcmask 1043456   ;;  %s204_s19 = scalar_lea.vmem [#allocation7], %s853_s6  ;;  %vm731_vm10 = vcmask 519168  }
  0x5b   : > { %v254_v16 = vsel %vm252_vm4, %v251_v14, 0  ;;  %s749_s21 = sshll.u32 %s204_s19, 4  ;;  %s734_s12 = scalar_lea.sflag [#allocation4], %s1363_s18  ;;  %s1417_s21 = int_to_ptr.vmem [resolvable:$true] %s749_s21 }
  0x5c   : > { %v212_v4 = vand.u32 3, %v207_v2  ;;  %v327_v20 = vand.u32 4294901760, %v254_v16  ;;  %s1103_s26 = scalar_lea.vmem %s1417_s21, 64  ;;  %s1196_s15 = smov [#allocation7]  }
  0x5d   : > { %p1104_p2 = scmp.ne.s32.totalorder %s1417_s21, %s1103_s26  ;;  %s1107_s16 = sshll.u32 %s1196_s15, 4  ;;  %s1108_s16 = int_to_ptr.vmem [resolvable:$false] %s1107_s16 }
  0x5e   : > { %vm220_vm5 = vcmp.eq.s32.totalorder %v212_v4, 0  ;;  %vm223_vm6 = vcmp.eq.s32.totalorder %v212_v4, 1  ;;  %vm226_vm7 = vcmp.eq.s32.totalorder %v212_v4, 2  ;;  %vm229_vm8 = vcmp.eq.s32.totalorder %v212_v4, 3  ;;  %s1109_s23 = scalar_lea.vmem %s1108_s16, 128  ;;  %p1110_p9 = scmp.lt.s32.totalorder %s1417_s21, %s1108_s16 }
  0x5f   : > { %v856_v6 = vsel %vm220_vm5, 1.0, %v1195_v3  ;;  %v857_v7 = vsel %vm223_vm6, 1.0, %v1195_v3  ;;  %v858_v8 = vsel %vm226_vm7, 1.0, %v1195_v3  ;;  %v859_v9 = vsel %vm229_vm8, 1.0, %v1195_v3  ;;  %p1105_p6 = pnand %p1104_p2, %p1313_p13  ;;  %p1111_p12 = scmp.lt.s32.totalorder %s1109_s23, %s1103_s26 }
  0x60   : > { %v232_v10 = vmul.f32 %v856_v6, %v205_v5  ;;  %v233_v11 = vmul.f32 %v857_v7, %v205_v5  ;;  %v234_v12 = vmul.f32 %v858_v8, %v205_v5  ;;  %v235_v13 = vmul.f32 %v859_v9, %v205_v5 }
  0x61   : > { %v246_v15 = vsel %vm245_vm1, %v856_v6, %v857_v7  ;;  %v328_v25 = vsub.f32 %v254_v16, %v327_v20  ;;  %p1106_p8 = pneg %p1105_p6  ;;  %p1112_p0 = por %p1111_p12, %p1110_p9 }
  0x62   : > { %v237_v17 = vrot.slane %v233_v11, 4  ;;  %v240_v18 = vrot.slane %v235_v13, 4  ;;  %v248_v19 = vsel %vm247_vm2, %v246_v15, %v858_v8 }
  0x63   : > { %v250_v21 = vsel %vm249_vm3, %v248_v19, %v859_v9  ;;  %v329_v29 = vand.u32 4294901760, %v328_v25  ;;  %p1113_p5 = pnand %p1112_p0, %p1106_p8 }
  0x64   : > { %v243_v22 = vsel %vm242_vm9, %v232_v10, %v237_v17  ;;  %v244_v23 = vsel %vm242_vm9, %v234_v12, %v240_v18  ;;  %v257_v24 = vsel %vm242_vm9, %v250_v21, 0 }
  0x65   : > { %v260_v26 = vand.u32 4294901760, %v243_v22  ;;  %v263_v27 = vand.u32 4294901760, %v244_v23  ;;  %v266_v28 = vand.u32 4294901760, %v257_v24  ;;  %v330_v34 = vsub.f32 %v328_v25, %v329_v29 }
  0x67   : > { %v943_v30 = vpack.c.bf16 %v263_v27, %v260_v26  ;;  %v339_v31 = vsub.f32 %v243_v22, %v260_v26  ;;  %v346_v32 = vsub.f32 %v244_v23, %v263_v27  ;;  %v353_v33 = vsub.f32 %v257_v24, %v266_v28 }
  0x68   : > { %v331_v38 = vand.u32 4294901760, %v330_v34 }
  0x69   : > { %944 = vmatpush3.bf16.msra.mxu1 %v943_v30  ;;  %953 = vmatpush3.bf16.msra.mxu0 %v943_v30  ;;  %v340_v35 = vand.u32 4294901760, %v339_v31  ;;  %v347_v36 = vand.u32 4294901760, %v346_v32  ;;  %v354_v37 = vand.u32 4294901760, %v353_v33  ;;  %v949_v47 = vpack.c.bf16 %v346_v32, %v339_v31 }
  0x6a   : > { %892 = vmatprep.subr.mxu1 %v1195_v3  ;;  %919 = vmatprep.subr.mxu0 %v1195_v3 }
  0x6b   : > { %v341_v39 = vsub.f32 %v339_v31, %v340_v35  ;;  %v348_v40 = vsub.f32 %v346_v32, %v347_v36  ;;  %v955_v41 = vpack.c.bf16 %v347_v36, %v340_v35  ;;  %v355_v44 = vsub.f32 %v353_v33, %v354_v37 }
  0x6d   : > { %893 = vmatpush3.msra.mxu1 %v266_v28  ;;  %920 = vmatpush3.msra.mxu0 %v266_v28  ;;  %v342_v42 = vand.u32 4294901760, %v341_v39  ;;  %v349_v43 = vand.u32 4294901760, %v348_v40  ;;  %v356_v46 = vand.u32 4294901760, %v355_v44 }
  0x6e   : > { %895 = vmatmul.mubr.f32.vlgmr.msra.gmra.mrb[0].mxu1 %v331_v38  ;;  %922 = vmatmul.mubr.f32.vlgmr.msra.gmra.mrb[0].mxu0 %v329_v29 }
  0x6f   : > { %945 = vmatprep.subr.bf16.mxu1 %v1193_v1  ;;  %954 = vmatprep.subr.bf16.mxu0 %v1193_v1  ;;  %v946_v45 = vpack.c.bf16 %v349_v43, %v342_v42 }
  0x70   : > { %956 = vmatpush3.bf16.msra.mxu0 %v955_v41  ;;  %903 = vmatprep.mubr.msk.f32.mxu1 %vm1194_vm0, %v1195_v3 }
  0x71   : > { %947 = vmatpush3.bf16.msra.mxu1 %v946_v45  ;;  %928 = vmatprep.subr.mxu0 %v1195_v3 }
  0x72   : > { %901 = vmatprep.subr.mxu1 %v1195_v3  ;;  %930 = vmatprep.mubr.msk.f32.mxu0 %vm1194_vm0, %v1195_v3 }
  0x74   : > { %929 = vmatpush3.msra.mxu0 %v354_v37 }
  0x75   : > { %902 = vmatpush3.msra.mxu1 %v356_v46  ;;  %957 = vmatprep.subr.bf16.mxu0 %v1193_v1 }
  0x76   : > { %904 = vmatmul.mubr.f32.vlgmr.msra.gmra.mrb[0].mxu1 %v327_v20  ;;  %931 = vmatmul.mubr.f32.vlgmr.msra.gmra.mrb[0].mxu0 %v327_v20 }
  0x77   : > { %948 = vmatprep.subr.bf16.mxu1 %v1193_v1  ;;  %959 = vmatpush3.bf16.msra.mxu0 %v943_v30 }
  0x78   : > { %950 = vmatpush3.bf16.msra.mxu1 %v949_v47  ;;  %937 = vmatprep.subr.mxu0 %v1195_v3 }
  0x79   : > { %910 = vmatprep.subr.mxu1 %v1195_v3  ;;  %912 = vmatprep.mubr.msk.f32.mxu1 %vm1194_vm0, %v1195_v3 }
  0x7a   : > { %939 = vmatprep.mubr.msk.f32.mxu0 %vm1194_vm0, %v1195_v3 }
  0x7b   : > { %938 = vmatpush3.msra.mxu0 %v266_v28 }
  0x7c   : > { %911 = vmatpush3.msra.mxu1 %v353_v33 }
  0x7e   : > { %913 = vmatmul.mubr.f32.vlgmr.msra.gmra.mrb[0].mxu1 %v328_v25  ;;  %940 = vmatmul.mubr.f32.vlgmr.msra.gmra.mrb[0].mxu0 %v327_v20 }
 0x151   : > { %v497_v48 = vpop.f32.mrb[0].mxu1  ;;  %v727_v49 = vpop.f32.mrb[0].mxu0 }
 0x152   : > { %v960_v50 = vadd.f32 %v727_v49, %v497_v48  ;;  %v914_v51 = vpop.f32.mrb[1].mxu1  ;;  %v941_v52 = vpop.f32.mrb[1].mxu0 }
 0x154   : > { %732 = vst.msk [vmem:[%s204_s19] sm:$0xf] %vm731_vm10, %v960_v50 }
 0x155   : > { %1116 = shalt.err (!%p1113_p5)
}
 0x156   : > { %s1117_s24 = scalar_lea.hbm %s1415_s5, 64  ;;  %s1121_s30 = scalar_lea.hbm %s1466_s2, 128 }
 0x157   : > { %p1118_p10 = scmp.ne.s32.totalorder %s1415_s5, %s1117_s24  ;;  %p1122_p7 = scmp.lt.u32.totalorder %s1415_s5, %s1466_s2 }
 0x158   : > { %p1123_p3 = scmp.lt.u32.totalorder %s1121_s30, %s1117_s24  ;;  %p1125_p2 = scmp.lt.u32.totalorder %s1117_s24, %s1415_s5 }
 0x159   : > { %p1119_p4 = pnand %p1118_p10, %p1313_p13 }
 0x15a   : > { %p1124_p11 = por %p1123_p3, %p1122_p7 }
 0x15b   : > { %p1120_p1 = pneg %p1119_p4 }
 0x15c   : > { %p1126_p6 = por %p1125_p2, %p1124_p11 }
 0x15e   : > { %p1127_p8 = pnand %p1126_p6, %p1120_p1 }
 0x160   : > { %1130 = shalt.err (!%p1127_p8)
}
 0x161   : > { %975 = dma.vmem_to_hbm [thread:$0]  (%p1313_p13), %s1417_s21, 64, %s1415_s5, %s734_s12  }
 0x162 PF: > { %s761_s7 = sand.u32 1, %s1169_s9   ;;  %p1485_p9 = scmp.ne.s32.totalorder %s1474_s20, 0 }
 0x163   : > { %p1486_p12 = scmp.ge.s32.totalorder %s1189_s14, 2  ;;  %s762_s8 = scalar_lea.sflag [#allocation4], %s761_s7 }
 0x165   : > { %p986_p0 = pnand %p1486_p12, %p1485_p9 }
 0x167   : > { %1164 = dma.done.wait (!%p986_p0), %s762_s8, 64  }
 0x168   : > { %1166 = vsyncadd (!%p986_p0), %s762_s8, 4294967232  ;;  %s19_s14 = sadd.s32 1, %s1189_s14   ;;  %s1487_s9 = smov %s1173_s10 }
 0x169   : > { %p16_p5 = scmp.ge.s32.totalorder %s19_s14, 4   ;;  %s1488_s10 = smov %s1177_s11 }
 0x16a   : > { %s1489_s11 = smov %s1321_s28  ;;  %s1490_s12 = smov %s1185_s13 }
 0x16b   : > { %s1491_s13 = smov %s1493_s25  ;;  %18 = sbr.rel (!%p16_p5) target bundleno = 7 (0x7), region = 78 }
 0x172   :  { %767 = vsyncpa [#allocation3], 1 }
 0x173   :  { %769 = vsyncpa [#allocation3 + $0x1], 1 }
 0x174   :  { %770 = vsyncpa [#allocation6], 1 }
 0x175   :  { %771 = vsyncpa [#allocation4], 1 }
 0x176   :  { %773 = vsyncpa [#allocation4 + $0x1], 1 }

</bundles_post_ra>
